<compile_context>
chip_gen: v5e
topology: v5e:2x2
jax: 0.10.0
libtpu: 0.0.40
codegen_flags: <defaults>
</compile_context>

<pallas_src>
import functools

import jax
import jax.numpy as jnp
from jax.experimental import pallas as pl
from jax.experimental.pallas import tpu as pltpu


def cross_attn_kernel(q_ref, x_ref, wq_ref, wkv_ref, o_ref, *, num_heads):
    """One batch element: fused QKV projection + head-batched causal softmax attention."""
    H = num_heads
    n, C = q_ref.shape
    N = x_ref.shape[0]
    D = C // H

    # --- Full-width projections: one MXU pass each, bf16 operands, f32 accumulation.
    # (attention scale is pre-folded into wq on the host; weights arrive bf16.)
    q = q_ref[...].astype(jnp.bfloat16)                                      # (n, C)
    x = x_ref[...].astype(jnp.bfloat16)                                      # (N, C)
    qh_all = jnp.dot(q, wq_ref[...], preferred_element_type=jnp.float32)     # (n, C)
    kv_all = jnp.dot(x, wkv_ref[...], preferred_element_type=jnp.float32)    # (N, 2C)

    # --- Split heads ONCE into head-major stacks (static column slices stacked
    # along a new leading axis).  kv column layout matches torch's reshape:
    # cols [0:C] -> k heads, cols [C:2C] -> v heads.
    qh = jnp.stack([qh_all[:, h * D:(h + 1) * D] for h in range(H)], axis=0)          # (H, n, D)
    kh = jnp.stack([kv_all[:, h * D:(h + 1) * D] for h in range(H)], axis=0)          # (H, N, D)
    vh = jnp.stack([kv_all[:, C + h * D:C + (h + 1) * D] for h in range(H)], axis=0)  # (H, N, D)

    # --- Scores for ALL heads in one batched dot (H = batch dim), bf16 MXU operands.
    s = jnp.einsum("hqd,hkd->hqk",
                   qh.astype(jnp.bfloat16), kh.astype(jnp.bfloat16),
                   preferred_element_type=jnp.float32)                        # (H, n, N)

    # --- Causal mask built ONCE, broadcast over heads.
    # torch SDPA is_causal=True with L != S: top-left-aligned tril (key j <= query i).
    row = jax.lax.broadcasted_iota(jnp.int32, (1, n, N), 1)
    col = jax.lax.broadcasted_iota(jnp.int32, (1, n, N), 2)
    s = jnp.where(col <= row, s, -1e30)          # finite sentinel, no NaN risk

    # --- Single softmax over the combined (H, n, N) block (2 cross-lane
    # reductions total instead of 2*H per-head ones).
    m = jnp.max(s, axis=-1, keepdims=True)
    p = jnp.exp(s - m)
    denom = jnp.sum(p, axis=-1, keepdims=True)                                # (H, n, 1)

    # --- p @ v for all heads in one batched dot; normalize via EUP reciprocal.
    out = jnp.einsum("hqk,hkd->hqd",
                     p.astype(jnp.bfloat16), vh.astype(jnp.bfloat16),
                     preferred_element_type=jnp.float32)                      # (H, n, D)
    out = out * pl.reciprocal(denom, approx=True)

    # --- Assemble (n, C) once and store directly in the final layout.
    o_ref[...] = jnp.concatenate([out[h] for h in range(H)], axis=-1).astype(o_ref.dtype)


def cross_attention(q, x, wq_weight, wkv_weight, num_heads):
    """Matches CrossAttention.forward (no bias, no final proj applied in forward)."""
    B, n, C = q.shape
    _, N, _ = x.shape
    H = num_heads
    D = C // H
    scale = float(D) ** (-0.5)

    # PyTorch Linear: y = x @ W.T ; W is (out, in).  Fold the attention scale into
    # the q weight (computed once per call, amortized over the whole batch) and
    # cast both weights to bf16 for the MXU (halves weight DMA bytes).
    wq_t = (wq_weight.T * scale).astype(jnp.bfloat16)     # (C, C)
    wkv_t = wkv_weight.T.astype(jnp.bfloat16)             # (C, 2C)

    itemsize = jnp.dtype(q.dtype).itemsize
    cost = pl.CostEstimate(
        flops=int(B * (2 * n * C * C            # q projection
                       + 2 * N * C * (2 * C)    # kv projection
                       + 2 * n * N * C          # scores (all heads)
                       + 2 * n * N * C)),       # p @ v (all heads)
        transcendentals=int(B * H * n * N),     # exp
        bytes_accessed=int(itemsize * (2 * B * n * C + B * N * C)
                           + 2 * (C * C + C * 2 * C)),    # bf16 weights
    )

    kernel = functools.partial(cross_attn_kernel, num_heads=H)

    # grid=(B,), marked parallel: splits across the 2 TensorCores on v7x; on
    # single-core v5e/v6e it is a short serial loop.  Weight block indices are
    # constant across the grid so weights are DMA'd once.  Output is produced
    # directly in (B, n, C) layout (no post-kernel transpose/reshape).
    return pl.pallas_call(
        kernel,
        out_shape=jax.ShapeDtypeStruct((B, n, C), q.dtype),
        grid=(B,),
        in_specs=[
            pl.BlockSpec((None, n, C), lambda b: (b, 0, 0)),     # q (squeezed batch)
            pl.BlockSpec((None, N, C), lambda b: (b, 0, 0)),     # x (squeezed batch)
            pl.BlockSpec((C, C), lambda b: (0, 0)),              # wq_t (shared)
            pl.BlockSpec((C, 2 * C), lambda b: (0, 0)),          # wkv_t (shared)
        ],
        out_specs=pl.BlockSpec((None, n, C), lambda b: (b, 0, 0)),
        compiler_params=pltpu.CompilerParams(
            dimension_semantics=("parallel",)),
        cost_estimate=cost,
    )(q, x, wq_t, wkv_t)


def _reference(q, x, wq_weight, wkv_weight, num_heads):
    """Pure-JAX f32 reference reproducing the PyTorch forward for validation."""
    B, n, C = q.shape
    _, N, _ = x.shape
    H = num_heads
    D = C // H
    scale = float(D) ** (-0.5)

    qp = (q @ wq_weight.T).reshape(B, n, H, D).transpose(0, 2, 1, 3)        # (B,H,n,D)
    kv = (x @ wkv_weight.T).reshape(B, N, 2, H, D).transpose(2, 0, 3, 1, 4)
    k, v = kv[0], kv[1]                                                     # (B,H,N,D)

    s = jnp.einsum("bhnd,bhmd->bhnm", qp, k) * scale
    mask = jnp.arange(N)[None, :] <= jnp.arange(n)[:, None]                 # (n, N)
    s = jnp.where(mask[None, None], s, -jnp.inf)
    p = jax.nn.softmax(s, axis=-1)
    o = jnp.einsum("bhnm,bhmd->bhnd", p, v)
    return o.transpose(0, 2, 1, 3).reshape(B, n, C)


if __name__ == "__main__":
    B, n, N = 2, 8, 16
    num_heads = 4
    embed_dim = 32   # qkv_dim = 8

    key = jax.random.PRNGKey(0)
    k_q, k_x, k_wq, k_wkv, k_proj = jax.random.split(key, 5)

    q_in = jax.random.normal(k_q, (B, n, embed_dim), dtype=jnp.float32)
    x_in = jax.random.normal(k_x, (B, N, embed_dim), dtype=jnp.float32)

    # Deterministic "module" parameters (qkv_bias=False, so no biases).
    wq_weight = jax.random.normal(k_wq, (embed_dim, embed_dim), jnp.float32) * 0.05
    wkv_weight = jax.random.normal(k_wkv, (2 * embed_dim, embed_dim), jnp.float32) * 0.05
    proj_weight = jax.random.normal(k_proj, (embed_dim, embed_dim), jnp.float32) * 0.05
    # TODO(synk): self.proj is defined in __init__ but never applied in forward(); kept for parity only.

    out = cross_attention(q_in, x_in, wq_weight, wkv_weight, num_heads)
    out = jax.block_until_ready(out)

    ref = _reference(q_in, x_in, wq_weight, wkv_weight, num_heads)
    assert out.shape == (B, n, embed_dim)
    max_err = float(jnp.max(jnp.abs(out - ref)))
    # Tolerance accounts for bf16 MXU operands (inputs/weights/p rounded to bf16)
    # and the EUP approximate reciprocal in the softmax normalization.
    assert jnp.allclose(out, ref, atol=2e-2, rtol=2e-2), f"mismatch vs reference (max|err|={max_err})"

    print("KERNEL_OK")
</pallas_src>

<mosaic_0001>
module attributes {stable_mosaic.version = 11 : i64} {
  func.func @cross_attn_kernel(%arg0: i32, %arg1: memref<1x8x32xf32, #tpu.memory_space<vmem>>, %arg2: memref<1x16x32xf32, #tpu.memory_space<vmem>>, %arg3: memref<32x32xbf16, #tpu.memory_space<vmem>>, %arg4: memref<32x64xbf16, #tpu.memory_space<vmem>>, %arg5: memref<1x8x32xf32, #tpu.memory_space<vmem>>) attributes {dimension_semantics = [#tpu.dimension_semantics<parallel>], iteration_bounds = array<i64: 2>, scalar_prefetch = 0 : i64, scratch_operands = 0 : i64, tpu.core_type = #tpu.core_type<tc>, window_params = [{transform_indices = @transform_0, window_bounds = array<i64: 1, 8, 32>}, {transform_indices = @transform_1, window_bounds = array<i64: 1, 16, 32>}, {pipeline_mode = #tpu.pipeline_mode<synchronous>, transform_indices = @transform_2, window_bounds = array<i64: 32, 32>}, {pipeline_mode = #tpu.pipeline_mode<synchronous>, transform_indices = @transform_3, window_bounds = array<i64: 32, 64>}, {transform_indices = @transform_4, window_bounds = array<i64: 1, 8, 32>}]} {
    %c0 = arith.constant 0 : index
    %c0_0 = arith.constant 0 : index
    %c0_1 = arith.constant 0 : index
    %0 = vector.load %arg1[%c0, %c0_0, %c0_1] : memref<1x8x32xf32, #tpu.memory_space<vmem>>, vector<1x8x32xf32>
    %1 = vector.shape_cast %0 : vector<1x8x32xf32> to vector<8x32xf32>
    %2 = arith.truncf %1 : vector<8x32xf32> to vector<8x32xbf16>
    %c0_2 = arith.constant 0 : index
    %c0_3 = arith.constant 0 : index
    %c0_4 = arith.constant 0 : index
    %3 = vector.load %arg2[%c0_2, %c0_3, %c0_4] : memref<1x16x32xf32, #tpu.memory_space<vmem>>, vector<1x16x32xf32>
    %4 = vector.shape_cast %3 : vector<1x16x32xf32> to vector<16x32xf32>
    %5 = arith.truncf %4 : vector<16x32xf32> to vector<16x32xbf16>
    %c0_5 = arith.constant 0 : index
    %c0_6 = arith.constant 0 : index
    %6 = vector.load %arg3[%c0_5, %c0_6] : memref<32x32xbf16, #tpu.memory_space<vmem>>, vector<32x32xbf16>
    %cst = arith.constant dense<0.000000e+00> : vector<8x32xf32>
    %7 = tpu.matmul %2, %6, %cst {dimension_numbers = #tpu.dot_dimension_numbers<[1], [0], [0], [1], [0, 0, 1, 1], [], []>} : vector<8x32xbf16>, vector<32x32xbf16>, vector<8x32xf32> -> vector<8x32xf32>
    %c0_7 = arith.constant 0 : index
    %c0_8 = arith.constant 0 : index
    %8 = vector.load %arg4[%c0_7, %c0_8] : memref<32x64xbf16, #tpu.memory_space<vmem>>, vector<32x64xbf16>
    %cst_9 = arith.constant dense<0.000000e+00> : vector<16x64xf32>
    %9 = tpu.matmul %5, %8, %cst_9 {dimension_numbers = #tpu.dot_dimension_numbers<[1], [0], [0], [1], [0, 0, 1, 1], [], []>} : vector<16x32xbf16>, vector<32x64xbf16>, vector<16x64xf32> -> vector<16x64xf32>
    %10 = vector.extract_strided_slice %7 {offsets = [0, 0], sizes = [8, 8], strides = [1, 1]} : vector<8x32xf32> to vector<8x8xf32>
    %11 = vector.extract_strided_slice %7 {offsets = [0, 8], sizes = [8, 8], strides = [1, 1]} : vector<8x32xf32> to vector<8x8xf32>
    %12 = vector.extract_strided_slice %7 {offsets = [0, 16], sizes = [8, 8], strides = [1, 1]} : vector<8x32xf32> to vector<8x8xf32>
    %13 = vector.extract_strided_slice %7 {offsets = [0, 24], sizes = [8, 8], strides = [1, 1]} : vector<8x32xf32> to vector<8x8xf32>
    %14 = vector.shape_cast %10 : vector<8x8xf32> to vector<1x8x8xf32>
    %15 = vector.shape_cast %11 : vector<8x8xf32> to vector<1x8x8xf32>
    %16 = vector.shape_cast %12 : vector<8x8xf32> to vector<1x8x8xf32>
    %17 = vector.shape_cast %13 : vector<8x8xf32> to vector<1x8x8xf32>
    %18 = tpu.concatenate %14, %15, %16, %17 in 0 : vector<1x8x8xf32>, vector<1x8x8xf32>, vector<1x8x8xf32>, vector<1x8x8xf32> -> vector<4x8x8xf32>
    %19 = vector.extract_strided_slice %9 {offsets = [0, 0], sizes = [16, 8], strides = [1, 1]} : vector<16x64xf32> to vector<16x8xf32>
    %20 = vector.extract_strided_slice %9 {offsets = [0, 8], sizes = [16, 8], strides = [1, 1]} : vector<16x64xf32> to vector<16x8xf32>
    %21 = vector.extract_strided_slice %9 {offsets = [0, 16], sizes = [16, 8], strides = [1, 1]} : vector<16x64xf32> to vector<16x8xf32>
    %22 = vector.extract_strided_slice %9 {offsets = [0, 24], sizes = [16, 8], strides = [1, 1]} : vector<16x64xf32> to vector<16x8xf32>
    %23 = vector.shape_cast %19 : vector<16x8xf32> to vector<1x16x8xf32>
    %24 = vector.shape_cast %20 : vector<16x8xf32> to vector<1x16x8xf32>
    %25 = vector.shape_cast %21 : vector<16x8xf32> to vector<1x16x8xf32>
    %26 = vector.shape_cast %22 : vector<16x8xf32> to vector<1x16x8xf32>
    %27 = tpu.concatenate %23, %24, %25, %26 in 0 : vector<1x16x8xf32>, vector<1x16x8xf32>, vector<1x16x8xf32>, vector<1x16x8xf32> -> vector<4x16x8xf32>
    %28 = vector.extract_strided_slice %9 {offsets = [0, 32], sizes = [16, 8], strides = [1, 1]} : vector<16x64xf32> to vector<16x8xf32>
    %29 = vector.extract_strided_slice %9 {offsets = [0, 40], sizes = [16, 8], strides = [1, 1]} : vector<16x64xf32> to vector<16x8xf32>
    %30 = vector.extract_strided_slice %9 {offsets = [0, 48], sizes = [16, 8], strides = [1, 1]} : vector<16x64xf32> to vector<16x8xf32>
    %31 = vector.extract_strided_slice %9 {offsets = [0, 56], sizes = [16, 8], strides = [1, 1]} : vector<16x64xf32> to vector<16x8xf32>
    %32 = vector.shape_cast %28 : vector<16x8xf32> to vector<1x16x8xf32>
    %33 = vector.shape_cast %29 : vector<16x8xf32> to vector<1x16x8xf32>
    %34 = vector.shape_cast %30 : vector<16x8xf32> to vector<1x16x8xf32>
    %35 = vector.shape_cast %31 : vector<16x8xf32> to vector<1x16x8xf32>
    %36 = tpu.concatenate %32, %33, %34, %35 in 0 : vector<1x16x8xf32>, vector<1x16x8xf32>, vector<1x16x8xf32>, vector<1x16x8xf32> -> vector<4x16x8xf32>
    %37 = arith.truncf %18 : vector<4x8x8xf32> to vector<4x8x8xbf16>
    %38 = arith.truncf %27 : vector<4x16x8xf32> to vector<4x16x8xbf16>
    "tpu.trace_start"() <{level = 10 : i32, message = "hqd,hkd->hqk"}> : () -> ()
    %cst_10 = arith.constant dense<0.000000e+00> : vector<4x8x16xf32>
    %39 = tpu.matmul %37, %38, %cst_10 {dimension_numbers = #tpu.dot_dimension_numbers<[2], [2], [1], [1], [0, 0, 0, 1, 1, 1], [0], [0]>} : vector<4x8x8xbf16>, vector<4x16x8xbf16>, vector<4x8x16xf32> -> vector<4x8x16xf32>
    "tpu.trace_stop"() : () -> ()
    %40 = tpu.iota {dimensions = array<i32: 1>} : vector<1x8x16xi32>
    %41 = tpu.iota {dimensions = array<i32: 2>} : vector<1x8x16xi32>
    %42 = arith.cmpi sle, %41, %40 : vector<1x8x16xi32>
    %cst_11 = arith.constant -1.000000e+30 : f32
    %43 = vector.shape_cast %42 : vector<1x8x16xi1> to vector<1x8x16xi1>
    %44 = vector.broadcast %43 : vector<1x8x16xi1> to vector<4x8x16xi1>
    %45 = vector.broadcast %cst_11 : f32 to vector<4x8x16xf32>
    %46 = arith.select %44, %39, %45 : vector<4x8x16xi1>, vector<4x8x16xf32>
    %cst_12 = arith.constant dense<0xFF800000> : vector<4x8xf32>
    %47 = vector.multi_reduction <maximumf>, %46, %cst_12 [2] : vector<4x8x16xf32> to vector<4x8xf32>
    %48 = vector.shape_cast %47 : vector<4x8xf32> to vector<4x8x1xf32>
    %49 = vector.broadcast %48 : vector<4x8x1xf32> to vector<4x8x16xf32>
    %50 = arith.subf %46, %49 : vector<4x8x16xf32>
    %51 = math.exp %50 : vector<4x8x16xf32>
    %cst_13 = arith.constant dense<0.000000e+00> : vector<4x8xf32>
    %52 = vector.multi_reduction <add>, %51, %cst_13 [2] : vector<4x8x16xf32> to vector<4x8xf32>
    %53 = vector.shape_cast %52 : vector<4x8xf32> to vector<4x8x1xf32>
    %54 = arith.truncf %51 : vector<4x8x16xf32> to vector<4x8x16xbf16>
    %55 = arith.truncf %36 : vector<4x16x8xf32> to vector<4x16x8xbf16>
    "tpu.trace_start"() <{level = 10 : i32, message = "hqk,hkd->hqd"}> : () -> ()
    %cst_14 = arith.constant dense<0.000000e+00> : vector<4x8x8xf32>
    %56 = tpu.matmul %54, %55, %cst_14 {dimension_numbers = #tpu.dot_dimension_numbers<[2], [1], [1], [2], [0, 0, 0, 1, 1, 2], [0], [0]>} : vector<4x8x16xbf16>, vector<4x16x8xbf16>, vector<4x8x8xf32> -> vector<4x8x8xf32>
    "tpu.trace_stop"() : () -> ()
    %57 = tpu.reciprocal %53 {approx = true} : vector<4x8x1xf32> -> vector<4x8x1xf32>
    %58 = vector.broadcast %57 : vector<4x8x1xf32> to vector<4x8x8xf32>
    %59 = arith.mulf %56, %58 : vector<4x8x8xf32>
    %60 = vector.extract_strided_slice %59 {offsets = [0, 0, 0], sizes = [1, 8, 8], strides = [1, 1, 1]} : vector<4x8x8xf32> to vector<1x8x8xf32>
    %61 = vector.shape_cast %60 : vector<1x8x8xf32> to vector<8x8xf32>
    %62 = vector.extract_strided_slice %59 {offsets = [1, 0, 0], sizes = [1, 8, 8], strides = [1, 1, 1]} : vector<4x8x8xf32> to vector<1x8x8xf32>
    %63 = vector.shape_cast %62 : vector<1x8x8xf32> to vector<8x8xf32>
    %64 = vector.extract_strided_slice %59 {offsets = [2, 0, 0], sizes = [1, 8, 8], strides = [1, 1, 1]} : vector<4x8x8xf32> to vector<1x8x8xf32>
    %65 = vector.shape_cast %64 : vector<1x8x8xf32> to vector<8x8xf32>
    %66 = vector.extract_strided_slice %59 {offsets = [3, 0, 0], sizes = [1, 8, 8], strides = [1, 1, 1]} : vector<4x8x8xf32> to vector<1x8x8xf32>
    %67 = vector.shape_cast %66 : vector<1x8x8xf32> to vector<8x8xf32>
    %68 = tpu.concatenate %61, %63, %65, %67 in 1 : vector<8x8xf32>, vector<8x8xf32>, vector<8x8xf32>, vector<8x8xf32> -> vector<8x32xf32>
    %c0_15 = arith.constant 0 : index
    %c0_16 = arith.constant 0 : index
    %c0_17 = arith.constant 0 : index
    %69 = vector.load %arg5[%c0_15, %c0_16, %c0_17] : memref<1x8x32xf32, #tpu.memory_space<vmem>>, vector<1x8x32xf32>
    %70 = vector.shape_cast %69 : vector<1x8x32xf32> to vector<8x32xf32>
    %71 = vector.shape_cast %68 : vector<8x32xf32> to vector<1x8x32xf32>
    tpu.vector_store %arg5[%c0_15, %c0_16, %c0_17], %71 {strides = array<i32>} : memref<1x8x32xf32, #tpu.memory_space<vmem>>, vector<1x8x32xf32>,
    return
  }
  func.func @transform_0(%arg0: i32) -> (i32, i32, i32) {
    %c0_i32 = arith.constant 0 : i32
    %c0_i32_0 = arith.constant 0 : i32
    %c0_i32_1 = arith.constant 0 : i32
    return %arg0, %c0_i32, %c0_i32_0 : i32, i32, i32
  }
  func.func @transform_1(%arg0: i32) -> (i32, i32, i32) {
    %c0_i32 = arith.constant 0 : i32
    %c0_i32_0 = arith.constant 0 : i32
    %c0_i32_1 = arith.constant 0 : i32
    return %arg0, %c0_i32, %c0_i32_0 : i32, i32, i32
  }
  func.func @transform_2(%arg0: i32) -> (i32, i32) {
    %c0_i32 = arith.constant 0 : i32
    %c0_i32_0 = arith.constant 0 : i32
    %c0_i32_1 = arith.constant 0 : i32
    return %c0_i32, %c0_i32_0 : i32, i32
  }
  func.func @transform_3(%arg0: i32) -> (i32, i32) {
    %c0_i32 = arith.constant 0 : i32
    %c0_i32_0 = arith.constant 0 : i32
    %c0_i32_1 = arith.constant 0 : i32
    return %c0_i32, %c0_i32_0 : i32, i32
  }
  func.func @transform_4(%arg0: i32) -> (i32, i32, i32) {
    %c0_i32 = arith.constant 0 : i32
    %c0_i32_0 = arith.constant 0 : i32
    %c0_i32_1 = arith.constant 0 : i32
    return %arg0, %c0_i32, %c0_i32_0 : i32, i32, i32
  }
}

</mosaic_0001>

<bundles_post_ra>
// kernel: tpu_custom_call.1
= control target key start
LH: loop header
LB: loop body
LE: loop exit
PB: predicated region body
PF: predicated region fallthrough
CT: control target
= control target key end

     0   :  { %s1405_s0 = inlined_call_operand.hbm [shape: f32[2,8,32], index: 0, kind: input, shape index: {}]   ;;  %s1406_s1 = inlined_call_operand.hbm [shape: f32[2,16,32], index: 1, kind: input, shape index: {}]   ;;  %s1407_s2 = inlined_call_operand.hbm [shape: bf16[32,32], index: 2, kind: input, shape index: {}]   ;;  %s1408_s3 = inlined_call_operand.hbm [shape: bf16[32,64], index: 3, kind: input, shape index: {}]   ;;  %s1409_s4 = inlined_call_operand.hbm [shape: f32[2,8,32], index: 4, kind: output, shape index: {}]  }
   0x1   :  { %1410 = sst [smem:[#allocation17_spill]] %s1407_s2 }
   0x2   :  { %1411 = sst [smem:[#allocation18_spill]] %s1408_s3 }
   0x3   :  { %9 = vsyncpa [#allocation3], 0 }
   0x4   :  { %11 = vsyncpa [#allocation3 + $0x1], 0 }
   0x5   :  { %12 = vsyncpa [#allocation6], 0 }
   0x6   :  { %14 = vsyncpa [#allocation6 + $0x1], 0 }
   0x7   :  { %15 = vsyncpa [#allocation9], 0 }
   0x8   :  { %16 = vsyncpa [#allocation4], 0 }
   0x9   :  { %18 = vsyncpa [#allocation4 + $0x1], 0  ;;  %s1185_s15 = smov 0   ;;  %s1187_s16 = smov 0  }
   0xa   :  { %s1189_s17 = smov 0   ;;  %s1191_s18 = smov 0  }
   0xb LB: > { %s1412_s2 = sld [smem:[#allocation17_spill]]  ;;  %s1209_s22 = sadd.s32 4294967295, %s1145_s18   ;;  %s1145_s18 = sphi %s1191_s18, %s1426_s18   ;;  %s1141_s17 = sphi %s1189_s17, %s1425_s17   ;;  %s1137_s16 = sphi %s1187_s16, %s1424_s16   ;;  %s1133_s15 = sphi %s1185_s15, %s1423_s15  }
   0xc   : > { %p783_p0 = scmp.ge.s32.totalorder %s1145_s18, 1  ;;  %p45_p1 = scmp.eq.s32.totalorder %s1209_s22, 0 }
   0xd   : > { %p149_p2 = scmp.lt.s32.totalorder %s1145_s18, 3  ;;  %s1147_s24 = smov [#allocation7]  }
   0xe   : > { %s162_s25 = sshll.u32 %s1147_s24, 4  ;;  %s1414_s3 = sld [smem:[#allocation18_spill]]  ;;  %s163_s25 = int_to_ptr.vmem [resolvable:$true] %s162_s25 }
   0xf   : > { %p1214_p3 = pnand %p783_p0, %p149_p2  ;;  %s1148_s29 = smov [#allocation8]  }
  0x10   : > { %s176_s30 = sshll.u32 %s1148_s29, 4  ;;  %s1149_s5 = smov 64   ;;  %s177_s30 = int_to_ptr.vmem [resolvable:$true] %s176_s30 }
  0x11   : > { %s160_s21 = sshll.u32 %s1412_s2, 4  ;;  %p847_p4 = pneg %p1214_p3  ;;  %s161_s21 = int_to_ptr.hbm [resolvable:$true] %s160_s21 }
  0x12   : > { %s1150_s6 = smov 4   ;;  %s782_s7 = sadd.s32 4294967294, %s1145_s18  }
  0x13   : > { %p848_p6 = pnand %p847_p4, %p45_p1  ;;  %s1228_s8 = sadd.s32 1, %s1145_s18  }
  0x14   : > { %s174_s28 = sshll.u32 %s1414_s3, 4  ;;  %s28_s9 = ssub.s32 %s1145_s18, %s1228_s8  ;;  %s175_s28 = int_to_ptr.hbm [resolvable:$true] %s174_s28 }
  0x15   : > { %850 = dma.hbm_to_vmem [thread:$0]  (!%p848_p6), %s161_s21, 256, %s163_s25, [#allocation6], %s1149_s5, %s1149_s5, %s1150_s6  }
  0x16   : > { %853 = dma.hbm_to_vmem [thread:$0]  (!%p848_p6), %s175_s28, 256, %s177_s30, [#allocation9], %s1149_s5, %s1149_s5, %s1150_s6  }
  0x17   : > { %s31_s10 = sadd.s32 1, %s1141_s17  ;;  %p29_p7 = scmp.eq.s32.totalorder %s28_s9, 0 }
  0x18   : > { %p38_p8 = scmp.ne.s32.totalorder %s1141_s17, %s1137_s16  ;;  %p39_p9 = scmp.eq.s32.totalorder %s1145_s18, 0 }
  0x19   : > { %p44_p10 = scmp.ne.s32.totalorder %s1137_s16, %s1133_s15  ;;  %p136_p13 = scmp.eq.s32.totalorder %s1209_s22, 1 }
  0x1a   : > { %s1239_s11 = scalar_select %p29_p7, %s1141_s17, %s31_s10  }
  0x1b   : > { %p1241_p11 = por %p39_p9, %p38_p8  ;;  %p1247_p12 = por %p45_p1, %p44_p10 }
  0x1c   : > { %1415 = sst [smem:[#allocation16_spill]] %s1239_s11  ;;  %p142_p0 = scmp.eq.s32.totalorder %s782_s7, 1 }
  0x1d   : > { %p867_p2 = scmp.lt.s32.totalorder %s1145_s18, 2  ;;  %s1254_s14 = sand.u32 1, %s1141_s17  }
  0x1e   : > { %p1256_p4 = por %p136_p13, %p38_p8  ;;  %p1260_p6 = por %p142_p0, %p44_p10 }
  0x1f   : > { %s787_s21 = sshll.u32 %s1254_s14, 3  ;;  %s788_s24 = sshll.u32 %s1145_s18, 3 }
  0x20   : > { %s198_s27 = scalar_lea.hbm %s1405_s0, %s788_s24  ;;  %s194_s28 = scalar_lea.vmem [#allocation2], %s787_s21 }
  0x21   : > { %s202_s29 = sshll.u32 %s194_s28, 4  ;;  %s200_s30 = sshll.u32 %s198_s27, 4  ;;  %s203_s29 = int_to_ptr.vmem [resolvable:$true] %s202_s29  ;;  %s201_s30 = int_to_ptr.hbm [resolvable:$true] %s200_s30 }
  0x22   : > { %p1271_p7 = pnand %p867_p2, %p1241_p11  ;;  %s789_s6 = sshll.u32 %s1254_s14, 4 }
  0x23   : > { %s209_s7 = sand.u32 1, %s1145_s18   ;;  %s191_s9 = scalar_lea.sflag [#allocation3], %s1254_s14 }
  0x24   : > { %s1007_s10 = sshra.s32 %s201_s30, 4  ;;  %p1011_p9 = pneg %p1271_p7  ;;  %s1008_s10 = int_to_ptr.hbm [resolvable:$true] %s1007_s10 }
  0x25   : > { %s1009_s2 = scalar_lea.hbm %s1008_s10, 8  ;;  %s1014_s24 = scalar_lea.hbm %s1405_s0, 16 }
  0x26   : > { %p1010_p8 = scmp.ne.s32.totalorder %s1008_s10, %s1009_s2  ;;  %p1015_p11 = scmp.lt.s32.totalorder %s1008_s10, %s1405_s0 }
  0x27   : > { %p1016_p0 = scmp.lt.s32.totalorder %s1014_s24, %s1009_s2 }
  0x28   : > { %p1012_p10 = pnand %p1011_p9, %p1010_p8 }
  0x29   : > { %p1017_p2 = por %p1016_p0, %p1015_p11 }
  0x2a   : > { %p1013_p13 = pneg %p1012_p10 }
  0x2c   : > { %p1018_p5 = pnand %p1017_p2, %p1013_p13 }
  0x2e   : > { %1021 = shalt.err (!%p1018_p5)
}
  0x2f   : > { %857 = dma.hbm_to_vmem [thread:$0]  (!%p1271_p7), %s201_s30, 128, %s203_s29, %s191_s9  }
  0x30   : > { %s213_s14 = scalar_lea.vmem [#allocation5], %s789_s6  ;;  %s828_s28 = sshll.u32 %s1145_s18, 4 }
  0x31   : > { %s221_s27 = sshll.u32 %s213_s14, 4  ;;  %s218_s21 = scalar_lea.hbm %s1406_s1, %s828_s28  ;;  %s222_s27 = int_to_ptr.vmem [resolvable:$true] %s221_s27 }
  0x32   : > { %s219_s11 = sshll.u32 %s218_s21, 4  ;;  %s210_s10 = scalar_lea.sflag [#allocation6], %s209_s7  ;;  %s220_s11 = int_to_ptr.hbm [resolvable:$true] %s219_s11 }
  0x33   : > { %s1037_s2 = sshra.s32 %s220_s11, 4  ;;  %s1044_s6 = scalar_lea.hbm %s1406_s1, 32  ;;  %s1038_s2 = int_to_ptr.hbm [resolvable:$true] %s1037_s2 }
  0x34   : > { %s1039_s24 = scalar_lea.hbm %s1038_s2, 16  ;;  %p1045_p13 = scmp.lt.s32.totalorder %s1038_s2, %s1406_s1 }
  0x35   : > { %p1040_p5 = scmp.ne.s32.totalorder %s1038_s2, %s1039_s24  ;;  %p1046_p11 = scmp.lt.s32.totalorder %s1044_s6, %s1039_s24 }
  0x37   : > { %p1042_p8 = pnand %p1040_p5, %p1011_p9  ;;  %p1047_p0 = por %p1046_p11, %p1045_p13 }
  0x39   : > { %p1043_p10 = pneg %p1042_p8 }
  0x3b   : > { %p1048_p2 = pnand %p1047_p0, %p1043_p10 }
  0x3d   : > { %1051 = shalt.err (!%p1048_p2)
}
  0x3e   : > { %s1151_s3 = smov 128   ;;  %s1152_s7 = smov 8  }
  0x3f   : > { %860 = dma.hbm_to_vmem [thread:$0]  (!%p1271_p7), %s220_s11, 256, %s222_s27, %s210_s10, %s1151_s3, %s1151_s3, %s1152_s7  }
  0x40   : > { %233 = sbr.rel (%p1214_p3) target bundleno = 870 (0x366), region = 36  ;;  %s1309_s26 = sand.u32 (!%p1214_p3), 1, %s1137_s16  }
  0x41   : > { %s793_s14 = sshll.u32 (!%p1214_p3), %s1309_s26, 3  ;;  %s236_s28 = scalar_lea.sflag (!%p1214_p3), [#allocation3], %s1309_s26 }
  0x42   : > { %s239_s12 = scalar_lea.vmem (!%p1214_p3), [#allocation2], %s793_s14 }
  0x45   : > { %1112 = dma.done.wait (%p1247_p12), %s236_s28, 128  }
  0x46   : > { %1114 = vsyncadd (%p1247_p12), %s236_s28, 4294967168  ;;  %s245_s23 = sand.u32 1, %s1209_s22   ;;  %s794_s11 = sshll.u32 %s1309_s26, 4 }
  0x47   : > { %s246_s5 = scalar_lea.sflag [#allocation6], %s245_s23  ;;  %s249_s27 = scalar_lea.vmem [#allocation5], %s794_s11 }
  0x48   : > { %1116 = dma.done.wait (%p1247_p12), %s246_s5, 256  }
  0x49   : > { %1118 = vsyncadd (%p1247_p12), %s246_s5, 4294967040 }
  0x4a   : > { %1120 = dma.done.wait (%p45_p1), [#allocation6], 256  }
  0x4b   : > { %1122 = vsyncadd (%p45_p1), [#allocation6], 4294967040 }
  0x4c   : > { %1124 = dma.done.wait (%p45_p1), [#allocation9], 256  }
  0x4d   : > { %1126 = vsyncadd (%p45_p1), [#allocation9], 4294967040  ;;  %v832_v0 = vld [vmem:[#allocation8 + $0x8] sm:$0xff]  ;;  %v830_v1 = vld [vmem:[#allocation7 + $0x8] sm:$0xff]  ;;  %vm312_vm0 = vcmask 261120   ;;  %s1153_s13 = smov 112   ;;  %v501_v57 = vlaneseq }
  0x4e   : > { %354 = vmatpush.bf16.msra.mxu1 %v832_v0  ;;  %v831_v2 = vld [vmem:[#allocation8] sm:$0xff]  ;;  %v294_v4 = vld [vmem:[%s249_s27 + $0x8] sm:$0xff]  ;;  %322 = vmatpush.bf16.msra.mxu0 %v830_v1  ;;  %v829_v5 = vld [vmem:[#allocation7] sm:$0xff]  ;;  %s1154_s21 = smov 104   ;;  %s1155_s10 = smov 120   ;;  %vm409_vm1 = vcmask 64512  }
  0x4f   : > { %v293_v3 = vld [vmem:[%s249_s27] sm:$0xff]  ;;  %v291_v6 = vld [vmem:[%s239_s12] sm:$0xff]  ;;  %s1156_s2 = smov 96   ;;  %v502_v58 = vshrl.u32 %v501_v57, 7  ;;  %v504_v59 = vand.u32 127, %v501_v57  ;;  %vm512_vm3 = vcmask 130048  }
  0x50   : > { %v295_v7 = vpack.c.bf16 %v294_v4, %v293_v3  ;;  %v292_v8 = vpack.c.bf16 %v291_v6, %v291_v6  ;;  %s1157_s24 = smov 8   ;;  %s1158_s29 = smov 24   ;;  %vm651_vm4 = vcmask 195584  }
  0x51   : > { %vm505_vm2 = vcmp.le.s32.totalorder %v504_v59, %v502_v58  ;;  %s1159_s30 = smov 16   ;;  %s825_s6 = sshll.u32 %s1209_s22, 3 }
  0x52   : > { %355 = vmatpush.bf16.msra.mxu1 %v831_v2  ;;  %323 = vmatpush.bf16.msra.mxu0 %v829_v5  ;;  %s665_s3 = scalar_lea.hbm %s1409_s4, %s825_s6  ;;  %s289_s7 = scalar_lea.vmem [#allocation10], %s793_s14 }
  0x53   : > { %s667_s28 = sshll.u32 %s289_s7, 4  ;;  %s669_s12 = sshll.u32 %s665_s3, 4  ;;  %s668_s28 = int_to_ptr.vmem [resolvable:$true] %s667_s28  ;;  %s670_s12 = int_to_ptr.hbm [resolvable:$true] %s669_s12 }
  0x54   : > { %s655_s22 = scalar_lea.sflag [#allocation4], %s1309_s26  ;;  %s1081_s23 = sshra.s32 %s670_s12, 4  ;;  %s1082_s23 = int_to_ptr.hbm [resolvable:$true] %s1081_s23 }
  0x55   : > { %815 = vmatmul.msk.bf16.vlgmr.msra.gmra.mxu1 %vm312_vm0, %v295_v7  ;;  %806 = vmatmul.msk.bf16.vlgmr.msra.gmra.mxu0 %vm312_vm0, %v292_v8  ;;  %s1083_s14 = scalar_lea.hbm %s1082_s23, 8  ;;  %s1087_s27 = scalar_lea.hbm %s1409_s4, 16 }
  0x56   : > { %p1084_p1 = scmp.ne.s32.totalorder %s1082_s23, %s1083_s14  ;;  %p1088_p7 = scmp.lt.s32.totalorder %s1082_s23, %s1409_s4 }
  0x57   : > { %p1089_p9 = scmp.lt.s32.totalorder %s1087_s27, %s1083_s14 }
  0x58   : > { %p1085_p3 = pnand %p1084_p1, %p1256_p4 }
  0x59   : > { %p1090_p5 = por %p1089_p9, %p1088_p7 }
  0x5a   : > { %p1086_p12 = pneg %p1085_p3 }
  0x5c   : > { %p1091_p8 = pnand %p1090_p5, %p1086_p12 }
  0xd2   : > { %v357_v9 = vpop.f32.mrf.mxu1  ;;  %v325_v10 = vpop.f32.mrf.mxu0 }
  0xd3   : > { %366 = vrot.lane.b32.xlu2 %v325_v10, %s1153_s13  ;;  %v396_v11 = vpack.c.bf16 %v357_v9, %v357_v9  ;;  %v392_v20 = vpack.c.bf16 %v325_v10, %v325_v10 }
  0xd5   : > { %v406_v16 = vunpack.c.l.b16 %v396_v11 }
  0xda   : > { %v359_v12 = vpop.f32.mrf.mxu1  ;;  %v327_v15 = vpop.f32.mrf.mxu0 }
  0xdb   : > { %v921_v13 = vpack.i.bf16 %v359_v12, %v357_v9  ;;  %v397_v14 = vpack.c.bf16 %v359_v12, %v359_v12  ;;  %369 = vrot.lane.b32.xlu2 %v325_v10, %s1154_s21 }
  0xdd   : > { %922 = vrot.lane.b32.xlu1 %v921_v13, %s1153_s13  ;;  %917 = vrot.lane.b32.xlu0 %v921_v13, %s1155_s10  ;;  %v407_v17 = vunpack.c.l.b16 %v397_v14 }
  0xdf   : > { %v1335_v18 = vpack.c.b16 %v407_v17, %v406_v16 }
  0xe1   : > { %v414_v19 = vsel %vm409_vm1, %v1335_v18, 0 }
  0xe2   : > { %423 = vmatpush.bf16.xpose.msra.mxu2 %v414_v19 }
  0xe5   : > { %927 = vrot.lane.b32.xlu1 %v921_v13, %s1154_s21  ;;  %363 = vrot.lane.b32.xlu0 %v325_v10, %s1155_s10 }
  0xe9   : > { %816 = vmatmul.msk.bf16.vlgmr.msra.gmra.mxu2 %vm409_vm1, %v392_v20 }
 0x12d   : > { %v367_v42 = vpop.permute.xlu2 %366 }
 0x12e   : > { %v394_v49 = vpack.c.bf16 %v367_v42, %v367_v42 }
 0x135   : > { %v370_v52 = vpop.permute.xlu2 %369 }
 0x136   : > { %v395_v53 = vpack.c.bf16 %v370_v52, %v370_v52 }
 0x14f   : > { %v923_v21 = vpop.permute.xlu1 %922  ;;  %v918_v22 = vpop.permute.xlu0 %917 }
 0x150   : > { %v925_v23 = vunpack.i.h.bf16 %v923_v21  ;;  %v924_v24 = vunpack.i.l.bf16 %v923_v21  ;;  %v920_v25 = vunpack.i.h.bf16 %v918_v22  ;;  %v919_v26 = vunpack.i.l.bf16 %v918_v22 }
 0x152   : > { %v401_v27 = vpack.c.bf16 %v925_v23, %v925_v23  ;;  %v400_v28 = vpack.c.bf16 %v924_v24, %v924_v24  ;;  %v399_v29 = vpack.c.bf16 %v920_v25, %v920_v25  ;;  %v398_v30 = vpack.c.bf16 %v919_v26, %v919_v26 }
 0x154   : > { %v456_v31 = vunpack.c.l.b16 %v401_v27  ;;  %v455_v32 = vunpack.c.l.b16 %v400_v28  ;;  %v432_v33 = vunpack.c.l.b16 %v399_v29  ;;  %v431_v34 = vunpack.c.l.b16 %v398_v30 }
 0x156   : > { %v433_v35 = vpack.c.b16 %v432_v33, %v431_v34  ;;  %v457_v36 = vpack.c.b16 %v456_v31, %v455_v32 }
 0x157   : > { %v928_v37 = vpop.permute.xlu1 %927  ;;  %v364_v43 = vpop.permute.xlu0 %363 }
 0x158   : > { %v930_v38 = vunpack.i.h.bf16 %v928_v37  ;;  %v929_v39 = vunpack.i.l.bf16 %v928_v37  ;;  %572 = vrot.lane.b32.xlu2 %v433_v35, %s1156_s2  ;;  %v438_v40 = vsel %vm409_vm1, %v433_v35, 0  ;;  %v462_v41 = vsel %vm409_vm1, %v457_v36, 0 }
 0x159   : > { %447 = vmatpush.bf16.xpose.msra.mxu3 %v438_v40  ;;  %471 = vmatpush.bf16.xpose.msrb.mxu0 %v462_v41  ;;  %v393_v48 = vpack.c.bf16 %v364_v43, %v364_v43 }
 0x15a   : > { %v403_v44 = vpack.c.bf16 %v930_v38, %v930_v38  ;;  %v402_v45 = vpack.c.bf16 %v929_v39, %v929_v39 }
 0x15c   : > { %v480_v46 = vunpack.c.l.b16 %v403_v44  ;;  %v479_v47 = vunpack.c.l.b16 %v402_v45 }
 0x15e   : > { %v481_v50 = vpack.c.b16 %v480_v46, %v479_v47 }
 0x160   : > { %817 = vmatmul.msk.bf16.vlgmr.msra.gmra.mxu3 %vm409_vm1, %v393_v48  ;;  %818 = vmatmul.msk.bf16.vlgmr.msrb.gmra.mxu0 %vm409_vm1, %v394_v49  ;;  %v486_v51 = vsel %vm409_vm1, %v481_v50, 0 }
 0x161   : > { %495 = vmatpush.bf16.xpose.msrb.mxu1 %v486_v51 }
 0x168   : > { %819 = vmatmul.msk.bf16.vlgmr.msrb.gmra.mxu1 %vm409_vm1, %v395_v53 }
 0x16c   : > { %v425_v54 = vpop.f32.mrf.mxu2 }
 0x16d   : > { %v508_v8 = vsel %vm505_vm2, %v425_v54, -1e+30 }
 0x16e   : > { %v513_v9 = vsel %vm512_vm3, %v508_v8, -inf }
 0x174   : > { %v427_v55 = vpop.f32.mrf.mxu2 }
 0x1b2   : > { %v573_v56 = vpop.permute.xlu2 %572 }
 0x1b3   : > { %585 = vmatpush.bf16.msrb.mxu3 %v573_v56 }
 0x1dd   : > { %v473_v60 = vpop.f32.mrf.mxu0 }
 0x1de   : > { %v510_v61 = vsel %vm505_vm2, %v473_v60, -1e+30 }
 0x1df   : > { %v519_v62 = vsel %vm512_vm3, %v510_v61, -inf }
 0x1e0   : > { %520 = vmax.xlane.f32.xlu1 %v519_v62 }
 0x1e3   : > { %v449_v63 = vpop.f32.mrf.mxu3 }
 0x1e4   : > { %v509_v0 = vsel %vm505_vm2, %v449_v63, -1e+30 }
 0x1e5   : > { %v475_v1 = vpop.f32.mrf.mxu0  ;;  %v497_v2 = vpop.f32.mrf.mxu1  ;;  %v516_v3 = vsel %vm512_vm3, %v509_v0, -inf }
 0x1e6   : > { %v511_v4 = vsel %vm505_vm2, %v497_v2, -1e+30  ;;  %517 = vmax.xlane.f32.xlu0 %v516_v3 }
 0x1e7   : > { %v522_v5 = vsel %vm512_vm3, %v511_v4, -inf }
 0x1e8   : > { %523 = vmax.xlane.f32.xlu2 %v522_v5 }
 0x1eb   : > { %v451_v6 = vpop.f32.mrf.mxu3 }
 0x1ed   : > { %v499_v7 = vpop.f32.mrf.mxu1 }
 0x1f9   : > { %610 = vrot.lane.b32.xlu1 %v481_v50, %s1156_s2 }
 0x1fa   : > { %591 = vrot.lane.b32.xlu0 %v457_v36, %s1156_s2 }
 0x200   : > { %553 = vrot.lane.b32.xlu2 %v1335_v18, %s1156_s2 }
 0x224   : > { %514 = vmax.xlane.f32.xlu0 %v513_v9 }
 0x253   : > { %v521_v10 = vpop.xlane.xlu1 %520 }
 0x254   : > { %v527_v11 = vsub.f32 %v510_v61, %v521_v10 }
 0x256   : > { %v533_v12 = vmul.f32 1.442695, %v527_v11 }
 0x258   : > { %931 = vpow2.f32 %v533_v12 }
 0x259   : > { %v518_v13 = vpop.xlane.xlu0 %517 }
 0x25a   : > { %v526_v14 = vsub.f32 %v509_v0, %v518_v13 }
 0x25b   : > { %v524_v15 = vpop.xlane.xlu2 %523 }
 0x25c   : > { %v531_v16 = vmul.f32 1.442695, %v526_v14  ;;  %v528_v17 = vsub.f32 %v511_v4, %v524_v15 }
 0x25e   : > { %v932_v19 = vpop.eup %931  ;;  %933 = vpow2.f32 %v531_v16  ;;  %v535_v20 = vmul.f32 1.442695, %v528_v17 }
 0x25f   : > { %v543_v21 = vsel %vm512_vm3, %v932_v19, 0.0  ;;  %v551_v30 = vpack.c.bf16 %v932_v19, %v932_v19 }
 0x260   : > { %935 = vpow2.f32 %v535_v20  ;;  %544 = vadd.xlane.f32.xlu2 %v543_v21 }
 0x263   : > { %v554_v18 = vpop.permute.xlu2 %553 }
 0x264   : > { %v934_v22 = vpop.eup %933  ;;  %566 = vmatpush.bf16.msrb.mxu2 %v554_v18 }
 0x265   : > { %v540_v23 = vsel %vm512_vm3, %v934_v22, 0.0  ;;  %v550_v24 = vpack.c.bf16 %v934_v22, %v934_v22 }
 0x266   : > { %v936_v25 = vpop.eup %935  ;;  %541 = vadd.xlane.f32.xlu1 %v540_v23 }
 0x267   : > { %821 = vmatmul.msk.bf16.vlgmr.msrb.gmra.mxu3 %vm512_vm3, %v550_v24  ;;  %v546_v26 = vsel %vm512_vm3, %v936_v25, 0.0  ;;  %v552_v29 = vpack.c.bf16 %v936_v25, %v936_v25 }
 0x268   : > { %547 = vadd.xlane.f32.xlu0 %v546_v26 }
 0x26b   : > { %v611_v27 = vpop.permute.xlu1 %610 }
 0x26c   : > { %v592_v28 = vpop.permute.xlu0 %591  ;;  %623 = vmatpush.bf16.msra.mxu1 %v611_v27 }
 0x26d   : > { %604 = vmatpush.bf16.msra.mxu0 %v592_v28 }
 0x26f   : > { %823 = vmatmul.msk.bf16.vlgmr.msra.gmra.mxu1 %vm512_vm3, %v552_v29 }
 0x270   : > { %822 = vmatmul.msk.bf16.vlgmr.msra.gmra.mxu0 %vm512_vm3, %v551_v30 }
 0x297   : > { %v515_v31 = vpop.xlane.xlu0 %514 }
 0x298   : > { %v525_v32 = vsub.f32 %v508_v8, %v515_v31 }
 0x29a   : > { %v529_v33 = vmul.f32 1.442695, %v525_v32 }
 0x29c   : > { %937 = vpow2.f32 %v529_v33 }
 0x2a2   : > { %v938_v34 = vpop.eup %937 }
 0x2a3   : > { %v537_v35 = vsel %vm512_vm3, %v938_v34, 0.0  ;;  %v549_v36 = vpack.c.bf16 %v938_v34, %v938_v34 }
 0x2a4   : > { %538 = vadd.xlane.f32.xlu1 %v537_v35 }
 0x2a5   : > { %820 = vmatmul.msk.bf16.vlgmr.msrb.gmra.mxu2 %vm512_vm3, %v549_v36 }
 0x2d3   : > { %v545_v39 = vpop.xlane.xlu2 %544 }
 0x2d9   : > { %v542_v37 = vpop.xlane.xlu1 %541 }
 0x2da   : > { %939 = vrcp.f32 %v542_v37 }
 0x2db   : > { %v548_v38 = vpop.xlane.xlu0 %547 }
 0x2dc   : > { %941 = vrcp.f32 %v548_v38 }
 0x2dd   : > { %943 = vrcp.f32 %v545_v39 }
 0x2e0   : > { %v940_v40 = vpop.eup %939 }
 0x2e2   : > { %v942_v43 = vpop.eup %941 }
 0x2e3   : > { %v944_v45 = vpop.eup %943 }
 0x2ea   : > { %v587_v41 = vpop.f32.mrf.mxu3 }
 0x2eb   : > { %v634_v42 = vmul.f32 %v940_v40, %v587_v41 }
 0x2ec   : > { %v625_v44 = vpop.f32.mrf.mxu1 }
 0x2ed   : > { %v636_v46 = vmul.f32 %v942_v43, %v625_v44  ;;  %638 = vrot.lane.b32.xlu0 %v634_v42, %s1157_s24  ;;  %v606_v47 = vpop.f32.mrf.mxu0 }
 0x2ee   : > { %v635_v48 = vmul.f32 %v944_v45, %v606_v47 }
 0x2ef   : > { %646 = vrot.lane.b32.xlu1 %v636_v46, %s1158_s29 }
 0x2f0   : > { %642 = vrot.lane.b32.xlu2 %v635_v48, %s1159_s30 }
 0x2f2   : > { %v589_v49 = vpop.f32.mrf.mxu3 }
 0x2f4   : > { %v627_v50 = vpop.f32.mrf.mxu1 }
 0x2f5   : > { %v608_v51 = vpop.f32.mrf.mxu0 }
 0x317   : > { %v539_v54 = vpop.xlane.xlu1 %538 }
 0x318   : > { %945 = vrcp.f32 %v539_v54 }
 0x31e   : > { %v946_v55 = vpop.eup %945 }
 0x328   : > { %v568_v52 = vpop.f32.mrf.mxu2 }
 0x329   : > { %v633_v56 = vmul.f32 %v946_v55, %v568_v52 }
 0x330   : > { %v570_v53 = vpop.f32.mrf.mxu2 }
 0x34a   : > { %v643_v58 = vpop.permute.xlu2 %642 }
 0x35f   : > { %v639_v57 = vpop.permute.xlu0 %638 }
 0x360   : > { %v649_v59 = vsel %vm409_vm1, %v633_v56, %v639_v57 }
 0x361   : > { %v647_v60 = vpop.permute.xlu1 %646  ;;  %v650_v61 = vsel %vm512_vm3, %v649_v59, %v643_v58 }
 0x362   : > { %v652_v62 = vsel %vm651_vm4, %v650_v61, %v647_v60 }
 0x363   : > { %653 = vst.msk [vmem:[%s289_s7] sm:$0xff] %vm312_vm0, %v652_v62 }
 0x364   : > { %1094 = shalt.err (!%p1091_p8)
}
 0x365   : > { %845 = dma.vmem_to_hbm [thread:$0]  (%p1256_p4), %s668_s28, 128, %s670_s12, %s655_s22  }
 0x366 PF: > { %s681_s26 = sand.u32 1, %s1133_s15   ;;  %p1421_p10 = scmp.ge.s32.totalorder %s1145_s18, 2 }
 0x367   : > { %s682_s10 = scalar_lea.sflag [#allocation4], %s681_s26 }
 0x368   : > { %p862_p13 = pnand %p1421_p10, %p1260_p6 }
 0x36a   : > { %p863_p11 = pneg %p862_p13 }
 0x36c   : > { %1128 = dma.done.wait (%p863_p11), %s682_s10, 128  }
 0x36d   : > { %1130 = vsyncadd (%p863_p11), %s682_s10, 4294967168  ;;  %s1422_s2 = sld [smem:[#allocation16_spill]]  ;;  %p21_p0 = scmp.ge.s32.totalorder %s1228_s8, 4  }
 0x36e   : > { %s1423_s15 = smov %s1137_s16  ;;  %s1424_s16 = smov %s1141_s17 }
 0x36f   : > { %s1426_s18 = smov %s1228_s8  ;;  %23 = sbr.rel (!%p21_p0) target bundleno = 11 (0xb), region = 102 }
 0x373   : > { %s1425_s17 = smov %s1422_s2 }
 0x374   :  { %688 = vsyncpa [#allocation3], 1 }
 0x375   :  { %690 = vsyncpa [#allocation3 + $0x1], 1 }
 0x376   :  { %691 = vsyncpa [#allocation6], 1 }
 0x377   :  { %693 = vsyncpa [#allocation6 + $0x1], 1 }
 0x378   :  { %694 = vsyncpa [#allocation9], 1 }
 0x379   :  { %695 = vsyncpa [#allocation4], 1 }
 0x37a   :  { %697 = vsyncpa [#allocation4 + $0x1], 1 }

</bundles_post_ra>
